<compile_context>
chip_gen: v7x
topology: tpu7x:2x2x1
jax: 0.10.0
libtpu: 0.0.40
codegen_flags: <defaults>
</compile_context>

<pallas_src>
import functools

import jax
import jax.numpy as jnp
import numpy as np
from jax.experimental import pallas as pl
from jax.experimental.pallas import tpu as pltpu

N_GATES = 16

# gate_g(a, b) = G[g,0]*1 + G[g,1]*a + G[g,2]*b + G[g,3]*a*b   (same order as bin_op_s)
_GATE_COEFFS = np.array([
    # 1     a     b    a*b
    [0.0,  0.0,  0.0,  0.0],   # 0 : False
    [0.0,  0.0,  0.0,  1.0],   # 1 : a AND b
    [0.0,  1.0,  0.0, -1.0],   # 2 : a AND NOT b
    [0.0,  1.0,  0.0,  0.0],   # 3 : a
    [0.0,  0.0,  1.0, -1.0],   # 4 : NOT a AND b
    [0.0,  0.0,  1.0,  0.0],   # 5 : b
    [0.0,  1.0,  1.0, -2.0],   # 6 : XOR
    [0.0,  1.0,  1.0, -1.0],   # 7 : OR
    [1.0, -1.0, -1.0,  1.0],   # 8 : NOR
    [1.0, -1.0, -1.0,  2.0],   # 9 : XNOR
    [1.0,  0.0, -1.0,  0.0],   # 10: NOT b
    [1.0,  0.0, -1.0,  1.0],   # 11: a OR NOT b
    [1.0, -1.0,  0.0,  0.0],   # 12: NOT a
    [1.0, -1.0,  0.0,  1.0],   # 13: NOT a OR b
    [1.0,  0.0,  0.0, -1.0],   # 14: NAND
    [1.0,  0.0,  0.0,  0.0],   # 15: True
], dtype=np.float32)


def logic_layer_kernel(a_ref, b_ref, c_ref, o_ref):
    """out[n, y] = c0[y] + c2[y]*b[n,y] + a[n,y]*(c1[y] + c3[y]*b[n,y])   (Horner, f32 math).

    a_ref, b_ref: (batch_tile, out_tile) streamed operands (bf16 or f32)
    c_ref:        (4, out_tile) f32 collapsed gate coefficients
    o_ref:        (batch_tile, out_tile) f32
    """
    a = a_ref[...].astype(jnp.float32)
    b = b_ref[...].astype(jnp.float32)
    c0 = c_ref[0:1, :]
    c1 = c_ref[1:2, :]
    c2 = c_ref[2:3, :]
    c3 = c_ref[3:4, :]
    o_ref[...] = (c0 + c2 * b + a * (c1 + c3 * b)).astype(o_ref.dtype)


def _round_up(v, m):
    return (v + m - 1) // m * m


@functools.partial(jax.jit, static_argnames=("tau", "hard", "stream_dtype"))
def logic_layer_pallas(x, idx_a, idx_b, weights, *, tau=1.0, hard=False,
                       stream_dtype=jnp.bfloat16):
    """Forward pass of LogicLayer.

    x:       (batch, in_dim) f32 in [0, 1]
    idx_a/b: (out_dim,) int32 connectivity indices
    weights: (out_dim, 16) f32 raw gate logits
    hard=False -> training soft path (softmax(weights / tau))
    hard=True  -> eval / STE forward-value path (one_hot(argmax(weights)))
    stream_dtype: dtype the gathered a/b operands are streamed in (bf16 default;
                  compute and output stay f32).
    """
    if hard:
        w = jax.nn.one_hot(jnp.argmax(weights, axis=-1), N_GATES, dtype=jnp.float32)
    else:
        w = jax.nn.softmax(weights.astype(jnp.float32) / tau, axis=-1)

    # Collapse the 16-gate weighted sum into 4 coefficients of {1, a, b, ab}.
    # (Reassociates the f32 sum; soft path differs from the 16-term reference only
    # at ~1e-7 rounding level. Hard / one-hot path is exact.)
    coeff_t = jnp.transpose(w @ jnp.asarray(_GATE_COEFFS, dtype=jnp.float32))   # (4, out_dim)

    batch, _ = x.shape
    out_dim = weights.shape[0]

    # ---- Tile selection: lane-dense, VMEM-lean, and split across v7x's 2 TCs. ----
    out_tile = min(_round_up(out_dim, 128), 1024)
    b_tile = min(_round_up(batch, 8), 512)

    def _n_blocks(ot, bt):
        return (_round_up(out_dim, ot) // ot) * (_round_up(batch, bt) // bt)

    # Guarantee the parallel grid actually splits (>= 4 blocks when possible) so a
    # v7x megacore doesn't leave one TensorCore idle on small/medium problems.
    while _n_blocks(out_tile, b_tile) < 4:
        if b_tile > 16:
            b_tile = _round_up(b_tile // 2, 16)     # keep sublane dim bf16-friendly
        elif out_tile > 128:
            out_tile = _round_up(out_tile // 2, 128)
        else:
            break

    out_pad = _round_up(out_dim, out_tile)
    batch_pad = _round_up(batch, b_tile)

    # ---- Cheap padding: pad the small index vectors and x's batch rows, never the
    # big (batch, out_dim) gathered arrays. ----
    idx_a = jnp.asarray(idx_a, jnp.int32)
    idx_b = jnp.asarray(idx_b, jnp.int32)
    if out_pad != out_dim:
        idx_a = jnp.pad(idx_a, (0, out_pad - out_dim))          # extras point at column 0
        idx_b = jnp.pad(idx_b, (0, out_pad - out_dim))
        coeff_t = jnp.pad(coeff_t, ((0, 0), (0, out_pad - out_dim)))

    x_s = x.astype(stream_dtype)
    if batch_pad != batch:
        x_s = jnp.pad(x_s, ((0, batch_pad - batch), (0, 0)))

    # Connectivity gather (glue; indices fixed per layer). Directly emits the padded,
    # stream-dtype operands; allow_input_fusion lets XLA fuse these producers into the
    # pallas_call operands instead of round-tripping them through HBM.
    a = jnp.take(x_s, idx_a, axis=-1)     # (batch_pad, out_pad)
    b = jnp.take(x_s, idx_b, axis=-1)     # (batch_pad, out_pad)

    # Grid: (out tiles, batch tiles) -- batch innermost so the coefficient block index
    # is constant across consecutive steps (coeffs effectively resident per out tile).
    grid = (out_pad // out_tile, batch_pad // b_tile)

    out = pl.pallas_call(
        logic_layer_kernel,
        out_shape=jax.ShapeDtypeStruct((batch_pad, out_pad), jnp.float32),
        grid_spec=pltpu.PrefetchScalarGridSpec(
            num_scalar_prefetch=0,
            grid=grid,
            in_specs=[
                pl.BlockSpec((b_tile, out_tile), lambda j, i: (i, j)),
                pl.BlockSpec((b_tile, out_tile), lambda j, i: (i, j)),
                pl.BlockSpec((4, out_tile), lambda j, i: (0, j)),
            ],
            out_specs=pl.BlockSpec((b_tile, out_tile), lambda j, i: (i, j)),
        ),
        compiler_params=pltpu.CompilerParams(
            dimension_semantics=("parallel", "parallel"),
            vmem_limit_bytes=40 * 1024 * 1024,   # > v5e's 16 MiB default, headroom on v7x's 64 MiB
            allow_input_fusion=[True, True, True],
        ),
    )(a, b, coeff_t)

    if out_pad != out_dim or batch_pad != batch:
        out = out[:batch, :out_dim]
    return out.astype(x.dtype)


def logic_layer_reference(x, idx_a, idx_b, weights, *, tau=1.0, hard=False):
    """Pure-JAX reference mirroring LogicLayer.forward_python / bin_op_s (16-term sum)."""
    if hard:
        w = jax.nn.one_hot(jnp.argmax(weights, axis=-1), N_GATES, dtype=x.dtype)
    else:
        w = jax.nn.softmax(weights / tau, axis=-1).astype(x.dtype)
    a = jnp.take(x, idx_a, axis=-1)
    b = jnp.take(x, idx_b, axis=-1)
    ab = a * b
    gates = jnp.stack([
        jnp.zeros_like(a), ab, a - ab, a, b - ab, b,
        a + b - 2.0 * ab, a + b - ab, 1.0 - (a + b - ab),
        1.0 - (a + b - 2.0 * ab), 1.0 - b, 1.0 - b + ab,
        1.0 - a, 1.0 - a + ab, 1.0 - ab, jnp.ones_like(a),
    ], axis=-1)                                   # (batch, out_dim, 16)
    return jnp.sum(w[None, :, :] * gates, axis=-1)


def make_random_connections(key, in_dim, out_dim):
    """Deterministic reimplementation of LogicLayer.get_connections('random')."""
    assert out_dim * 2 >= in_dim
    k1, k2 = jax.random.split(key)
    c = jax.random.permutation(k1, 2 * out_dim) % in_dim
    c = jax.random.permutation(k2, in_dim)[c]
    c = c.reshape(2, out_dim).astype(jnp.int32)
    return c[0], c[1]


if __name__ == "__main__":
    key = jax.random.PRNGKey(0)
    k_x, k_w, k_c, k_x2, k_w2, k_c2 = jax.random.split(key, 6)

    # ---- Case 1: aligned toy shapes (batch=8, in_dim=32, out_dim=128) ----
    batch, in_dim, out_dim = 8, 32, 128
    x = jax.random.uniform(k_x, (batch, in_dim), dtype=jnp.float32)      # "bits" in [0, 1]
    weights = jax.random.normal(k_w, (out_dim, N_GATES), dtype=jnp.float32)
    idx_a, idx_b = make_random_connections(k_c, in_dim, out_dim)

    ref_soft = logic_layer_reference(x, idx_a, idx_b, weights, hard=False)
    ref_hard = logic_layer_reference(x, idx_a, idx_b, weights, hard=True)

    # Default fast path: bf16-streamed operands (f32 math / f32 output); bf16 rounding
    # of a/b bounds the deviation from the pure-f32 reference at ~1e-2.
    out_soft = jax.block_until_ready(
        logic_layer_pallas(x, idx_a, idx_b, weights, hard=False))
    assert out_soft.shape == (batch, out_dim)
    assert jnp.allclose(out_soft, ref_soft, atol=2e-2), "soft / bf16-stream mismatch"

    # Exactness check of the kernel math itself: f32-streamed operands.
    out_soft_f32 = jax.block_until_ready(
        logic_layer_pallas(x, idx_a, idx_b, weights, hard=False, stream_dtype=jnp.float32))
    assert jnp.allclose(out_soft_f32, ref_soft, atol=1e-5, rtol=1e-5), "soft / f32-stream mismatch"

    # Eval / STE-forward-value path (one-hot argmax weights).
    out_hard = jax.block_until_ready(
        logic_layer_pallas(x, idx_a, idx_b, weights, hard=True, stream_dtype=jnp.float32))
    assert jnp.allclose(out_hard, ref_hard, atol=1e-5, rtol=1e-5), "hard / f32-stream mismatch"

    # ---- Case 2: unaligned shapes exercising the index/batch padding path ----
    batch2, in_dim2, out_dim2 = 6, 20, 48
    x2 = jax.random.uniform(k_x2, (batch2, in_dim2), dtype=jnp.float32)
    weights2 = jax.random.normal(k_w2, (out_dim2, N_GATES), dtype=jnp.float32)
    idx_a2, idx_b2 = make_random_connections(k_c2, in_dim2, out_dim2)

    ref2 = logic_layer_reference(x2, idx_a2, idx_b2, weights2, hard=False)

    out2 = jax.block_until_ready(
        logic_layer_pallas(x2, idx_a2, idx_b2, weights2, hard=False))
    assert out2.shape == (batch2, out_dim2)
    assert jnp.allclose(out2, ref2, atol=2e-2), "case2 / bf16-stream mismatch"

    out2_f32 = jax.block_until_ready(
        logic_layer_pallas(x2, idx_a2, idx_b2, weights2, hard=False, stream_dtype=jnp.float32))
    assert jnp.allclose(out2_f32, ref2, atol=1e-5, rtol=1e-5), "case2 / f32-stream mismatch"

    # TODO(synk): PackBitsTensor bit-packed eval path (difflogic_cuda.eval) and the custom
    # backward (backward_x / backward_w, grad_factor scaling) are not part of this forward kernel.
    print("KERNEL_OK")
</pallas_src>

<mosaic_0001>
module attributes {stable_mosaic.version = 11 : i64} {
  func.func @logic_layer_kernel(%arg0: i32, %arg1: i32, %arg2: memref<8x128xbf16, #tpu.memory_space<vmem>>, %arg3: memref<8x128xbf16, #tpu.memory_space<vmem>>, %arg4: memref<4x128xf32, #tpu.memory_space<vmem>>, %arg5: memref<8x128xf32, #tpu.memory_space<vmem>>) attributes {dimension_semantics = [#tpu.dimension_semantics<parallel>, #tpu.dimension_semantics<parallel>], iteration_bounds = array<i64: 1, 1>, scalar_prefetch = 0 : i64, scratch_operands = 0 : i64, tpu.core_type = #tpu.core_type<tc>, window_params = [{transform_indices = @transform_0, window_bounds = array<i64: 8, 128>}, {transform_indices = @transform_1, window_bounds = array<i64: 8, 128>}, {transform_indices = @transform_2, window_bounds = array<i64: 4, 128>}, {transform_indices = @transform_3, window_bounds = array<i64: 8, 128>}]} {
    %c0 = arith.constant 0 : index
    %c0_0 = arith.constant 0 : index
    %0 = vector.load %arg2[%c0, %c0_0] : memref<8x128xbf16, #tpu.memory_space<vmem>>, vector<8x128xbf16>
    %1 = arith.extf %0 : vector<8x128xbf16> to vector<8x128xf32>
    %c0_1 = arith.constant 0 : index
    %c0_2 = arith.constant 0 : index
    %2 = vector.load %arg3[%c0_1, %c0_2] : memref<8x128xbf16, #tpu.memory_space<vmem>>, vector<8x128xbf16>
    %3 = arith.extf %2 : vector<8x128xbf16> to vector<8x128xf32>
    %c0_3 = arith.constant 0 : index
    %c0_4 = arith.constant 0 : index
    %4 = vector.load %arg4[%c0_3, %c0_4] : memref<4x128xf32, #tpu.memory_space<vmem>>, vector<1x128xf32>
    %c1 = arith.constant 1 : index
    %c0_5 = arith.constant 0 : index
    %5 = vector.load %arg4[%c1, %c0_5] : memref<4x128xf32, #tpu.memory_space<vmem>>, vector<1x128xf32>
    %c2 = arith.constant 2 : index
    %c0_6 = arith.constant 0 : index
    %6 = vector.load %arg4[%c2, %c0_6] : memref<4x128xf32, #tpu.memory_space<vmem>>, vector<1x128xf32>
    %c3 = arith.constant 3 : index
    %c0_7 = arith.constant 0 : index
    %7 = vector.load %arg4[%c3, %c0_7] : memref<4x128xf32, #tpu.memory_space<vmem>>, vector<1x128xf32>
    %8 = vector.broadcast %6 : vector<1x128xf32> to vector<8x128xf32>
    %9 = arith.mulf %8, %3 : vector<8x128xf32>
    %10 = vector.broadcast %4 : vector<1x128xf32> to vector<8x128xf32>
    %11 = arith.addf %10, %9 : vector<8x128xf32>
    %12 = vector.broadcast %7 : vector<1x128xf32> to vector<8x128xf32>
    %13 = arith.mulf %12, %3 : vector<8x128xf32>
    %14 = vector.broadcast %5 : vector<1x128xf32> to vector<8x128xf32>
    %15 = arith.addf %14, %13 : vector<8x128xf32>
    %16 = arith.mulf %1, %15 : vector<8x128xf32>
    %17 = arith.addf %11, %16 : vector<8x128xf32>
    %c0_8 = arith.constant 0 : index
    %c0_9 = arith.constant 0 : index
    %18 = vector.load %arg5[%c0_8, %c0_9] : memref<8x128xf32, #tpu.memory_space<vmem>>, vector<8x128xf32>
    tpu.vector_store %arg5[%c0_8, %c0_9], %17 {strides = array<i32>} : memref<8x128xf32, #tpu.memory_space<vmem>>, vector<8x128xf32>,
    return
  }
  func.func @transform_0(%arg0: i32, %arg1: i32) -> (i32, i32) {
    %c0_i32 = arith.constant 0 : i32
    return %arg1, %arg0 : i32, i32
  }
  func.func @transform_1(%arg0: i32, %arg1: i32) -> (i32, i32) {
    %c0_i32 = arith.constant 0 : i32
    return %arg1, %arg0 : i32, i32
  }
  func.func @transform_2(%arg0: i32, %arg1: i32) -> (i32, i32) {
    %c0_i32 = arith.constant 0 : i32
    %c0_i32_0 = arith.constant 0 : i32
    return %c0_i32, %arg0 : i32, i32
  }
  func.func @transform_3(%arg0: i32, %arg1: i32) -> (i32, i32) {
    %c0_i32 = arith.constant 0 : i32
    return %arg1, %arg0 : i32, i32
  }
}

</mosaic_0001>

<bundles_post_ra>
// kernel: logic_layer_pallas.2
= control target key start
LH: loop header
LB: loop body
LE: loop exit
PB: predicated region body
PF: predicated region fallthrough
CT: control target
= control target key end

     0   :  { %s213_s0 = inlined_call_operand.vmem [shape: f32[4,128], index: 0, kind: input, shape index: {}]   ;;  %s214_s1 = inlined_call_operand.vmem [shape: bf16[128,8], index: 1, kind: input, shape index: {}]   ;;  %s215_s2 = inlined_call_operand.vmem [shape: bf16[128,8], index: 2, kind: input, shape index: {}]   ;;  %s216_s3 = inlined_call_operand.vmem [shape: pred[128], index: 3, kind: input, shape index: {}]   ;;  %s217_s4 = inlined_call_operand.vmem [shape: pred[128], index: 4, kind: input, shape index: {}]   ;;  %s218_s5 = inlined_call_operand.<no memory space> [shape: bf16[], index: 5, kind: input, shape index: {}]   ;;  %s219_s6 = inlined_call_operand.hbm [shape: f32[8,128], index: 6, kind: output, shape index: {}]  }
   0x1   :  { %v11_v0 = vstv %s218_s5 }
   0x2   :  { %v12_v1 = vunpack.i.l.bf16 %v11_v0 }
   0x3   :  { %21 = vsyncpa [#allocation3], 0  ;;  %v32_v2 = vld [vmem:[%s215_s2] sm:$0xf]  ;;  %v137_v11 = vmov 0.0   ;;  %s138_s10 = smov [#allocation2]  }
   0x4   :  { %v35_v3 = vld [vmem:[%s217_s4] ss:$0 sm:$0xff]  ;;  %v33_v4 = vunpack.c.l.bf16 %v32_v2  ;;  %v107_v15 = vld [vmem:[%s213_s0 + $0x2] ss:$0 sm:$0xff]  ;;  %v109_v18 = vld [vmem:[%s213_s0 + $0x3] ss:$0 sm:$0xff] }
   0x5   :  { %v38_v5 = vand.u32 255, %v35_v3  ;;  %v47_v6 = vld [vmem:[%s214_s1] sm:$0xf]  ;;  %s99_s11 = sshll.u32 %s138_s10, 4  ;;  %s100_s11 = int_to_ptr.vmem [resolvable:$true] %s99_s11 }
   0x6   :  { %v50_v7 = vld [vmem:[%s216_s3] ss:$0 sm:$0xff]  ;;  %v48_v8 = vunpack.c.l.bf16 %v47_v6  ;;  %v110_v21 = vld [vmem:[%s213_s0 + $0x1] ss:$0 sm:$0xff]  ;;  %s113_s12 = scalar_lea.vmem %s100_s11, 128  ;;  %p118_p1 = scmp.lt.s32.totalorder %s100_s11, %s100_s11 }
   0x7   :  { %v53_v9 = vand.u32 255, %v50_v7  ;;  %vm41_vm0 = vcmp.ne.s32.totalorder %v38_v5, 0  ;;  %v108_v20 = vld [vmem:[%s213_s0] ss:$0 sm:$0xff]  ;;  %p114_p0 = scmp.ne.s32.totalorder %s100_s11, %s113_s12  ;;  %p119_p2 = scmp.lt.s32.totalorder %s113_s12, %s113_s12 }
   0x8   :  { %v42_v10 = vsel %vm41_vm0, %v33_v4, %v12_v1 }
   0x9   :  { %vm56_vm1 = vcmp.ne.s32.totalorder %v53_v9, 0  ;;  %v44_v12 = vpack.c.bf16 %v137_v11, %v42_v10  ;;  %p120_p3 = por %p119_p2, %p118_p1 }
   0xa   :  { %v57_v13 = vsel %vm56_vm1, %v48_v8, %v12_v1 }
   0xb   :  { %v59_v14 = vpack.c.bf16 %v137_v11, %v57_v13  ;;  %46 = vst [vmem:[#allocation4] sm:$0xf] %v44_v12  ;;  %p121_p4 = pnand %p120_p3, %p114_p0 }
   0xd   :  { %61 = vst [vmem:[#allocation5] sm:$0xf] %v59_v14 }
  0x12   :  { %v62_v16 = vld [vmem:[#allocation4] sm:$0xf] }
  0x13   :  { %v63_v22 = vunpack.c.l.bf16 %v62_v16 }
  0x14   :  { %v64_v17 = vld [vmem:[#allocation5] sm:$0xf] }
  0x15   :  { %v65_v19 = vunpack.c.l.bf16 %v64_v17 }
  0x17   :  { %v74_v23 = vmul.f32 %v107_v15, %v65_v19  ;;  %v84_v24 = vmul.f32 %v109_v18, %v65_v19 }
  0x19   :  { %v79_v25 = vadd.f32 %v108_v20, %v74_v23  ;;  %v89_v26 = vadd.f32 %v110_v21, %v84_v24 }
  0x1b   :  { %v90_v27 = vmul.f32 %v89_v26, %v63_v22 }
  0x1d   :  { %v91_v28 = vadd.f32 %v90_v27, %v79_v25 }
  0x1f   :  { %92 = vst [vmem:[#allocation2] sm:$0xff] %v91_v28 }
  0x20   :  { %124 = shalt.err (!%p121_p4)
}
  0x21   :  { %s125_s14 = scalar_lea.hbm %s219_s6, 128 }
  0x22   :  { %p126_p5 = scmp.ne.s32.totalorder %s219_s6, %s125_s14  ;;  %p129_p6 = scmp.lt.u32.totalorder %s125_s14, %s219_s6 }
  0x24   :  { %p131_p7 = pnand %p129_p6, %p126_p5 }
  0x26   :  { %134 = shalt.err (!%p131_p7)
}
  0x27   :  { %102 = dma.vmem_to_hbm [thread:$0]  %s100_s11, 128, %s219_s6, [#allocation3]  }
  0x28   :  { %135 = dma.done.wait [#allocation3], 128  }
  0x29   :  { %136 = vsyncadd [#allocation3], 4294967168 }
  0x2a   :  { %106 = vsyncpa [#allocation3], 1 }

</bundles_post_ra>
